<compile_context>
chip_gen: v6e
topology: v6e:2x2x1
jax: 0.10.0
libtpu: 0.0.40
codegen_flags: <defaults>
</compile_context>

<pallas_src>
import functools

import jax
import jax.numpy as jnp
from jax.experimental import pallas as pl
from jax.experimental.pallas import tpu as pltpu

W_MIX = 0.2      # self.w in the PyTorch module
LANES = 128      # padded hidden / output width (one full lane tile)


def _round_up(x, m):
    return (x + m - 1) // m * m


def _hall_kernel(emb_ref, grad_ref, w1_ref, w23_ref, b_ref, o_ref, *, ld):
    """emb_ref/grad_ref: (TN, L*D) bf16.  w1_ref: (2*L*D, 128) bf16 (pre-scaled
    fold of mix+mean into fc1).  w23_ref: (256, 128) f32.  b_ref: (3, 128) f32.
    o_ref: (TN, 128) lane-dense padded output."""
    emb = emb_ref[...]                                  # (TN, L*D) bf16
    grad = grad_ref[...]                                # (TN, L*D) bf16

    w1e = w1_ref[0:ld, :]                               # (L*D, 128) bf16
    w1g = w1_ref[ld:2 * ld, :]                          # (L*D, 128) bf16
    w2 = w23_ref[0:LANES, :]                            # (128, 128) f32
    w3 = w23_ref[LANES:2 * LANES, :]                    # (128, 128) f32
    b = b_ref[...]                                      # (3, 128)   f32

    # Folded mix + mean + fc1: two bf16 MXU matmuls with f32 accumulation.
    h1 = (jnp.dot(emb, w1e, preferred_element_type=jnp.float32)
          + jnp.dot(grad, w1g, preferred_element_type=jnp.float32)
          + b[0:1, :])
    h1 = jnp.maximum(h1, 0.0)
    h2 = jnp.maximum(
        jnp.dot(h1, w2, preferred_element_type=jnp.float32) + b[1:2, :], 0.0)
    z = jnp.dot(h2, w3, preferred_element_type=jnp.float32) + b[2:3, :]

    # Lane-dense (TN, 128) unmasked store; padded columns hold sigmoid(0)=0.5,
    # sliced off outside the kernel.
    o_ref[...] = jax.nn.sigmoid(z)


def pack_params(params, seq_len):
    """Pack the 3-layer MLP into (fc1-fold slab, fc2/fc3 slab, bias slab).

    fc1 absorbs the mix (w, 1-w) and the mean over the L sequence positions:
      W1e = (W_MIX / L)       * tile(w1, (L, 1))   -> rows [0 : L*D)
      W1g = ((1 - W_MIX) / L) * tile(w1, (L, 1))   -> rows [L*D : 2*L*D)
    Columns are zero-padded to 128 lanes (exact: padded columns stay 0 through
    the ReLU chain).  fc1 slab is bf16 (matches bf16 inputs on the MXU);
    fc2/fc3 and biases stay f32.
    """
    w1, b1 = params["w1"], params["b1"]
    w2, b2 = params["w2"], params["b2"]
    w3, b3 = params["w3"], params["b3"]
    D, H = w1.shape
    O = w3.shape[1]
    ld = seq_len * D

    w1e = (W_MIX / seq_len) * jnp.tile(w1, (seq_len, 1))          # (L*D, H)
    w1g = ((1.0 - W_MIX) / seq_len) * jnp.tile(w1, (seq_len, 1))  # (L*D, H)
    w1_all = (jnp.zeros((2 * ld, LANES), jnp.float32)
              .at[:ld, :H].set(w1e)
              .at[ld:, :H].set(w1g)).astype(jnp.bfloat16)         # (2*L*D, 128)

    w23_all = (jnp.zeros((2 * LANES, LANES), jnp.float32)
               .at[:H, :H].set(w2)
               .at[LANES:LANES + H, :O].set(w3))                  # (256, 128)

    b_all = (jnp.zeros((3, LANES), jnp.float32)
             .at[0, :H].set(b1[0])
             .at[1, :H].set(b2[0])
             .at[2, :O].set(b3[0]))                               # (3, 128)
    return w1_all, w23_all, b_all


def hall_model_forward(embedding, gradient, w1_all, w23_all, b_all, output_dim):
    """embedding, gradient: (N, L, D) float.  Returns (N, output_dim) f32."""
    N, L, D = embedding.shape
    ld = L * D

    # Lane-dense (N, L*D) bf16 inputs (reshape is free for contiguous rows;
    # bf16 halves HBM input bytes — callers should ideally supply bf16).
    emb = embedding.reshape(N, ld).astype(jnp.bfloat16)
    grad = gradient.reshape(N, ld).astype(jnp.bfloat16)

    # Tile choice: big tiles amortize the ~0.35 us/step overhead and feed the
    # MXU many rows.  Cap so double-buffered blocks fit comfortably within the
    # default scoped VMEM on every generation (incl. v7x's 64 MiB physical).
    per_item_bytes = 2 * ld * 2 + LANES * 4     # two bf16 input rows + f32 out row
    vmem_budget = 6 * 1024 * 1024               # per buffer set (x2 double buffering)
    max_tile = max(8, (vmem_budget // per_item_bytes) // 8 * 8)
    tile_n = min(1024, max_tile, _round_up(N, 8))

    # Pad N up to a tile multiple (never one giant block for ragged large N).
    n_pad = _round_up(N, tile_n)
    if n_pad != N:
        emb = jnp.pad(emb, ((0, n_pad - N), (0, 0)))
        grad = jnp.pad(grad, ((0, n_pad - N), (0, 0)))

    grid = (n_pad // tile_n,)
    kernel = functools.partial(_hall_kernel, ld=ld)
    out_padded = pl.pallas_call(
        kernel,
        out_shape=jax.ShapeDtypeStruct((n_pad, LANES), jnp.float32),
        grid=grid,
        in_specs=[
            pl.BlockSpec((tile_n, ld), lambda i: (i, 0)),
            pl.BlockSpec((tile_n, ld), lambda i: (i, 0)),
            pl.BlockSpec(w1_all.shape, lambda i: (0, 0)),    # fc1 fold: untiled
            pl.BlockSpec(w23_all.shape, lambda i: (0, 0)),   # fc2/fc3:  untiled
            pl.BlockSpec(b_all.shape, lambda i: (0, 0)),     # biases:   untiled
        ],
        out_specs=pl.BlockSpec((tile_n, LANES), lambda i: (i, 0)),
        compiler_params=pltpu.CompilerParams(
            dimension_semantics=("parallel",)),
    )(emb, grad, w1_all, w23_all, b_all)

    return out_padded[:N, :output_dim]


def init_params(key, input_dim, hidden_dim, output_dim):
    """Deterministic synthetic init (Linear-like uniform fan-in scaling)."""
    ks = jax.random.split(key, 6)

    def lin(kw, kb, fan_in, fan_out):
        bound = 1.0 / jnp.sqrt(fan_in)
        w = jax.random.uniform(kw, (fan_in, fan_out), jnp.float32, -bound, bound)
        b = jax.random.uniform(kb, (1, fan_out), jnp.float32, -bound, bound)
        return w, b

    w1, b1 = lin(ks[0], ks[1], input_dim, hidden_dim)
    w2, b2 = lin(ks[2], ks[3], hidden_dim, hidden_dim)
    w3, b3 = lin(ks[4], ks[5], hidden_dim, output_dim)
    return {"w1": w1, "b1": b1, "w2": w2, "b2": b2, "w3": w3, "b3": b3}


def reference_forward(embedding, gradient, params):
    """Pure-JAX f32 reference of the PyTorch forward, for sanity check."""
    e = jnp.mean(embedding.astype(jnp.float32), axis=1)
    g = jnp.mean(gradient.astype(jnp.float32), axis=1)
    x = W_MIX * e + (1.0 - W_MIX) * g
    x = jnp.maximum(x @ params["w1"] + params["b1"], 0.0)
    x = jnp.maximum(x @ params["w2"] + params["b2"], 0.0)
    x = x @ params["w3"] + params["b3"]
    return jax.nn.sigmoid(x)


if __name__ == "__main__":
    # Shapes consistent with the module: N list items, seq len L,
    # input_dim=32, hidden_dim=32, output_dim=4.
    N, L, INPUT_DIM, HIDDEN_DIM, OUTPUT_DIM = 2, 8, 32, 32, 4

    key = jax.random.PRNGKey(0)
    k_emb, k_grad, k_params, k_big = jax.random.split(key, 4)

    params = init_params(k_params, INPUT_DIM, HIDDEN_DIM, OUTPUT_DIM)
    w1_all, w23_all, b_all = pack_params(params, seq_len=L)  # pack once, reuse

    embedding = jax.random.normal(k_emb, (N, L, INPUT_DIM), jnp.float32)
    gradient = jax.random.normal(k_grad, (N, L, INPUT_DIM), jnp.float32)

    out = hall_model_forward(embedding, gradient, w1_all, w23_all, b_all,
                             OUTPUT_DIM)
    out = jax.block_until_ready(out)
    # Compare against the f32 reference evaluated on the bf16-quantized inputs
    # that the kernel actually consumes (remaining delta: bf16 fc1 weights).
    emb_q = embedding.astype(jnp.bfloat16).astype(jnp.float32)
    grad_q = gradient.astype(jnp.bfloat16).astype(jnp.float32)
    ref = reference_forward(emb_q, grad_q, params)
    assert out.shape == (N, OUTPUT_DIM)
    assert jnp.allclose(out, ref, atol=2e-2, rtol=2e-2), \
        float(jnp.max(jnp.abs(out - ref)))

    # Larger ragged batch: exercises N-padding, multi-step grid over N
    # (TILE_N up to 1024, 'parallel' axis -> megacore sharding on v7x).
    NB = 2050
    kb1, kb2 = jax.random.split(k_big)
    emb_b = jax.random.normal(kb1, (NB, L, INPUT_DIM), jnp.float32)
    grad_b = jax.random.normal(kb2, (NB, L, INPUT_DIM), jnp.float32)
    out_b = hall_model_forward(emb_b, grad_b, w1_all, w23_all, b_all,
                               OUTPUT_DIM)
    out_b = jax.block_until_ready(out_b)
    ref_b = reference_forward(emb_b.astype(jnp.bfloat16).astype(jnp.float32),
                              grad_b.astype(jnp.bfloat16).astype(jnp.float32),
                              params)
    assert out_b.shape == (NB, OUTPUT_DIM)
    assert jnp.allclose(out_b, ref_b, atol=2e-2, rtol=2e-2), \
        float(jnp.max(jnp.abs(out_b - ref_b)))

    print("KERNEL_OK")
</pallas_src>

<mosaic_0001>
module attributes {stable_mosaic.version = 11 : i64} {
  func.func @_hall_kernel(%arg0: i32, %arg1: memref<8x256xbf16, #tpu.memory_space<vmem>>, %arg2: memref<8x256xbf16, #tpu.memory_space<vmem>>, %arg3: memref<512x128xbf16, #tpu.memory_space<vmem>>, %arg4: memref<256x128xf32, #tpu.memory_space<vmem>>, %arg5: memref<3x128xf32, #tpu.memory_space<vmem>>, %arg6: memref<8x128xf32, #tpu.memory_space<vmem>>) attributes {dimension_semantics = [#tpu.dimension_semantics<parallel>], iteration_bounds = array<i64: 1>, scalar_prefetch = 0 : i64, scratch_operands = 0 : i64, tpu.core_type = #tpu.core_type<tc>, window_params = [{transform_indices = @transform_0, window_bounds = array<i64: 8, 256>}, {transform_indices = @transform_1, window_bounds = array<i64: 8, 256>}, {pipeline_mode = #tpu.pipeline_mode<synchronous>, transform_indices = @transform_2, window_bounds = array<i64: 512, 128>}, {pipeline_mode = #tpu.pipeline_mode<synchronous>, transform_indices = @transform_3, window_bounds = array<i64: 256, 128>}, {pipeline_mode = #tpu.pipeline_mode<synchronous>, transform_indices = @transform_4, window_bounds = array<i64: 3, 128>}, {transform_indices = @transform_5, window_bounds = array<i64: 8, 128>}]} {
    %c0 = arith.constant 0 : index
    %c0_0 = arith.constant 0 : index
    %0 = vector.load %arg1[%c0, %c0_0] : memref<8x256xbf16, #tpu.memory_space<vmem>>, vector<8x256xbf16>
    %c0_1 = arith.constant 0 : index
    %c0_2 = arith.constant 0 : index
    %1 = vector.load %arg2[%c0_1, %c0_2] : memref<8x256xbf16, #tpu.memory_space<vmem>>, vector<8x256xbf16>
    %c0_3 = arith.constant 0 : index
    %c0_4 = arith.constant 0 : index
    %2 = vector.load %arg3[%c0_3, %c0_4] : memref<512x128xbf16, #tpu.memory_space<vmem>>, vector<256x128xbf16>
    %c256 = arith.constant 256 : index
    %c0_5 = arith.constant 0 : index
    %3 = vector.load %arg3[%c256, %c0_5] : memref<512x128xbf16, #tpu.memory_space<vmem>>, vector<256x128xbf16>
    %c0_6 = arith.constant 0 : index
    %c0_7 = arith.constant 0 : index
    %4 = vector.load %arg4[%c0_6, %c0_7] : memref<256x128xf32, #tpu.memory_space<vmem>>, vector<128x128xf32>
    %c128 = arith.constant 128 : index
    %c0_8 = arith.constant 0 : index
    %5 = vector.load %arg4[%c128, %c0_8] : memref<256x128xf32, #tpu.memory_space<vmem>>, vector<128x128xf32>
    %c0_9 = arith.constant 0 : index
    %c0_10 = arith.constant 0 : index
    %6 = vector.load %arg5[%c0_9, %c0_10] : memref<3x128xf32, #tpu.memory_space<vmem>>, vector<3x128xf32>
    %cst = arith.constant dense<0.000000e+00> : vector<8x128xf32>
    %7 = tpu.matmul %0, %2, %cst {dimension_numbers = #tpu.dot_dimension_numbers<[1], [0], [0], [1], [0, 0, 1, 1], [], []>} : vector<8x256xbf16>, vector<256x128xbf16>, vector<8x128xf32> -> vector<8x128xf32>
    %cst_11 = arith.constant dense<0.000000e+00> : vector<8x128xf32>
    %8 = tpu.matmul %1, %3, %cst_11 {dimension_numbers = #tpu.dot_dimension_numbers<[1], [0], [0], [1], [0, 0, 1, 1], [], []>} : vector<8x256xbf16>, vector<256x128xbf16>, vector<8x128xf32> -> vector<8x128xf32>
    %9 = arith.addf %7, %8 : vector<8x128xf32>
    %10 = vector.extract_strided_slice %6 {offsets = [0, 0], sizes = [1, 128], strides = [1, 1]} : vector<3x128xf32> to vector<1x128xf32>
    %11 = vector.broadcast %10 : vector<1x128xf32> to vector<8x128xf32>
    %12 = arith.addf %9, %11 : vector<8x128xf32>
    %cst_12 = arith.constant 0.000000e+00 : f32
    %13 = vector.broadcast %cst_12 : f32 to vector<8x128xf32>
    %14 = arith.maximumf %12, %13 : vector<8x128xf32>
    %cst_13 = arith.constant dense<0.000000e+00> : vector<8x128xf32>
    %15 = tpu.matmul %14, %4, %cst_13 {dimension_numbers = #tpu.dot_dimension_numbers<[1], [0], [0], [1], [0, 0, 1, 1], [], []>} : vector<8x128xf32>, vector<128x128xf32>, vector<8x128xf32> -> vector<8x128xf32>
    %16 = vector.extract_strided_slice %6 {offsets = [1, 0], sizes = [1, 128], strides = [1, 1]} : vector<3x128xf32> to vector<1x128xf32>
    %17 = vector.broadcast %16 : vector<1x128xf32> to vector<8x128xf32>
    %18 = arith.addf %15, %17 : vector<8x128xf32>
    %cst_14 = arith.constant 0.000000e+00 : f32
    %19 = vector.broadcast %cst_14 : f32 to vector<8x128xf32>
    %20 = arith.maximumf %18, %19 : vector<8x128xf32>
    %cst_15 = arith.constant dense<0.000000e+00> : vector<8x128xf32>
    %21 = tpu.matmul %20, %5, %cst_15 {dimension_numbers = #tpu.dot_dimension_numbers<[1], [0], [0], [1], [0, 0, 1, 1], [], []>} : vector<8x128xf32>, vector<128x128xf32>, vector<8x128xf32> -> vector<8x128xf32>
    %22 = vector.extract_strided_slice %6 {offsets = [2, 0], sizes = [1, 128], strides = [1, 1]} : vector<3x128xf32> to vector<1x128xf32>
    %23 = vector.broadcast %22 : vector<1x128xf32> to vector<8x128xf32>
    %24 = arith.addf %21, %23 : vector<8x128xf32>
    %25 = arith.negf %24 : vector<8x128xf32>
    %26 = math.exp %25 : vector<8x128xf32>
    %cst_16 = arith.constant 1.000000e+00 : f32
    %27 = vector.broadcast %cst_16 : f32 to vector<8x128xf32>
    %28 = arith.addf %27, %26 : vector<8x128xf32>
    %29 = arith.divf %27, %28 : vector<8x128xf32>
    %c0_17 = arith.constant 0 : index
    %c0_18 = arith.constant 0 : index
    %30 = vector.load %arg6[%c0_17, %c0_18] : memref<8x128xf32, #tpu.memory_space<vmem>>, vector<8x128xf32>
    tpu.vector_store %arg6[%c0_17, %c0_18], %29 {strides = array<i32>} : memref<8x128xf32, #tpu.memory_space<vmem>>, vector<8x128xf32>,
    return
  }
  func.func @transform_0(%arg0: i32) -> (i32, i32) {
    %c0_i32 = arith.constant 0 : i32
    %c0_i32_0 = arith.constant 0 : i32
    return %arg0, %c0_i32 : i32, i32
  }
  func.func @transform_1(%arg0: i32) -> (i32, i32) {
    %c0_i32 = arith.constant 0 : i32
    %c0_i32_0 = arith.constant 0 : i32
    return %arg0, %c0_i32 : i32, i32
  }
  func.func @transform_2(%arg0: i32) -> (i32, i32) {
    %c0_i32 = arith.constant 0 : i32
    %c0_i32_0 = arith.constant 0 : i32
    %c0_i32_1 = arith.constant 0 : i32
    return %c0_i32, %c0_i32_0 : i32, i32
  }
  func.func @transform_3(%arg0: i32) -> (i32, i32) {
    %c0_i32 = arith.constant 0 : i32
    %c0_i32_0 = arith.constant 0 : i32
    %c0_i32_1 = arith.constant 0 : i32
    return %c0_i32, %c0_i32_0 : i32, i32
  }
  func.func @transform_4(%arg0: i32) -> (i32, i32) {
    %c0_i32 = arith.constant 0 : i32
    %c0_i32_0 = arith.constant 0 : i32
    %c0_i32_1 = arith.constant 0 : i32
    return %c0_i32, %c0_i32_0 : i32, i32
  }
  func.func @transform_5(%arg0: i32) -> (i32, i32) {
    %c0_i32 = arith.constant 0 : i32
    %c0_i32_0 = arith.constant 0 : i32
    return %arg0, %c0_i32 : i32, i32
  }
}

</mosaic_0001>

<bundles_post_ra>
// kernel: tpu_custom_call.1
= control target key start
LH: loop header
LB: loop body
LE: loop exit
PB: predicated region body
PF: predicated region fallthrough
CT: control target
= control target key end

     0   :  { %10 = vsyncpa [#allocation3], 0  ;;  %s1074_s0 = inlined_call_operand.hbm [shape: bf16[8,256], index: 0, kind: input, shape index: {}]   ;;  %s1075_s1 = inlined_call_operand.hbm [shape: bf16[8,256], index: 1, kind: input, shape index: {}]   ;;  %s1076_s2 = inlined_call_operand.hbm [shape: bf16[512,128], index: 2, kind: input, shape index: {}]   ;;  %s1077_s3 = inlined_call_operand.hbm [shape: f32[256,128], index: 3, kind: input, shape index: {}]   ;;  %s1078_s4 = inlined_call_operand.vmem [shape: f32[3,128], index: 4, kind: input, shape index: {}]   ;;  %s1079_s5 = inlined_call_operand.hbm [shape: f32[8,128], index: 5, kind: output, shape index: {}]  }
   0x1   :  { %11 = vsyncpa [#allocation6], 0 }
   0x2   :  { %12 = vsyncpa [#allocation9], 0 }
   0x3   :  { %13 = vsyncpa [#allocation4], 0  ;;  %s981_s18 = smov [#allocation5]   ;;  %s982_s20 = smov [#allocation2]  }
   0x4   :  { %s30_s19 = sshll.u32 %s981_s18, 4  ;;  %s20_s21 = sshll.u32 %s982_s20, 4  ;;  %s31_s19 = int_to_ptr.vmem [resolvable:$true] %s30_s19  ;;  %s21_s21 = int_to_ptr.vmem [resolvable:$true] %s20_s21 }
   0x5   :  { %s881_s22 = scalar_lea.vmem %s31_s19, 128  ;;  %p886_p1 = scmp.lt.s32.totalorder %s31_s19, %s31_s19 }
   0x6   :  { %p882_p0 = scmp.ne.s32.totalorder %s31_s19, %s881_s22  ;;  %p887_p2 = scmp.lt.s32.totalorder %s881_s22, %s881_s22 }
   0x8   :  { %p888_p3 = por %p887_p2, %p886_p1 }
   0xa   :  { %p889_p4 = pnand %p888_p3, %p882_p0 }
   0xc   :  { %892 = shalt.err (!%p889_p4)
}
   0xd   :  { %33 = dma.hbm_to_vmem [thread:$0]  %s1075_s1, 128, %s31_s19, [#allocation6]  }
   0xe   :  { %s901_s25 = scalar_lea.vmem %s21_s21, 128  ;;  %p906_p6 = scmp.lt.s32.totalorder %s21_s21, %s21_s21 }
   0xf   :  { %p902_p5 = scmp.ne.s32.totalorder %s21_s21, %s901_s25  ;;  %p907_p7 = scmp.lt.s32.totalorder %s901_s25, %s901_s25 }
  0x11   :  { %p908_p8 = por %p907_p7, %p906_p6 }
  0x13   :  { %p909_p9 = pnand %p908_p8, %p902_p5 }
  0x15   :  { %912 = shalt.err (!%p909_p9)
}
  0x16   :  { %23 = dma.hbm_to_vmem [thread:$0]  %s1074_s0, 128, %s21_s21, [#allocation3]  }
  0x17   :  { %s983_s28 = smov [#allocation7]  }
  0x18   :  { %s39_s29 = sshll.u32 %s983_s28, 4  ;;  %s40_s29 = int_to_ptr.vmem [resolvable:$true] %s39_s29 }
  0x19   :  { %s921_s30 = scalar_lea.vmem %s40_s29, 4096  ;;  %p926_p11 = scmp.lt.s32.totalorder %s40_s29, %s40_s29 }
  0x1a   :  { %p922_p10 = scmp.ne.s32.totalorder %s40_s29, %s921_s30  ;;  %p927_p12 = scmp.lt.s32.totalorder %s921_s30, %s921_s30 }
  0x1c   :  { %p928_p13 = por %p927_p12, %p926_p11 }
  0x1e   :  { %p929_p0 = pnand %p928_p13, %p922_p10 }
  0x20   :  { %932 = shalt.err (!%p929_p0)
}
  0x21   :  { %s984_s1 = smov 64   ;;  %s985_s6 = smov 4  }
  0x22   :  { %45 = dma.hbm_to_vmem [thread:$0]  %s1076_s2, 4096, %s40_s29, [#allocation6], %s984_s1, %s984_s1, %s985_s6  }
  0x23   :  { %s986_s9 = smov [#allocation8]  }
  0x24   :  { %s51_s10 = sshll.u32 %s986_s9, 4  ;;  %s52_s10 = int_to_ptr.vmem [resolvable:$true] %s51_s10 }
  0x25   :  { %s941_s0 = scalar_lea.vmem %s52_s10, 4096  ;;  %p946_p2 = scmp.lt.s32.totalorder %s52_s10, %s52_s10 }
  0x26   :  { %p942_p1 = scmp.ne.s32.totalorder %s52_s10, %s941_s0  ;;  %p947_p3 = scmp.lt.s32.totalorder %s941_s0, %s941_s0 }
  0x28   :  { %p948_p4 = por %p947_p3, %p946_p2 }
  0x2a   :  { %p949_p5 = pnand %p948_p4, %p942_p1 }
  0x2c   :  { %952 = shalt.err (!%p949_p5)
}
  0x2d   :  { %s987_s11 = smov 128   ;;  %s988_s12 = smov 8  }
  0x2e   :  { %57 = dma.hbm_to_vmem [thread:$0]  %s1077_s3, 4096, %s52_s10, [#allocation9], %s987_s11, %s987_s11, %s988_s12  }
  0x2f   :  { %973 = dma.done.wait [#allocation3], 128  }
  0x30   :  { %974 = vsyncadd [#allocation3], 4294967168 }
  0x31   :  { %975 = dma.done.wait [#allocation6], 4224  }
  0x32   :  { %976 = vsyncadd [#allocation6], 4294963072 }
  0x33   :  { %977 = dma.done.wait [#allocation9], 4096  }
  0x34   :  { %978 = vsyncadd [#allocation9], 4294963200  ;;  %v833_v0 = vld [vmem:[#allocation7 + $0xf8] sm:$0xff]   ;;  %v837_v4 = vld [vmem:[#allocation7 + $0xf0] sm:$0xff]   ;;  %v989_v38 = vmov 0.0   ;;  %vm990_vm0 = vmmov 0  }
  0x35   :  { %v834_v1 = vld [vmem:[#allocation7 + $0x78] sm:$0xff]   ;;  %674 = vmatprep.subr.bf16.mxu0 %v833_v0  ;;  %v838_v5 = vld [vmem:[#allocation7 + $0x70] sm:$0xff]   ;;  %v841_v8 = vld [vmem:[#allocation7 + $0xe8] sm:$0xff]  }
  0x36   :  { %v835_v2 = vld [vmem:[#allocation7 + $0xb8] sm:$0xff]   ;;  %696 = vmatprep.subr.bf16.mxu1 %v834_v1  ;;  %v839_v6 = vld [vmem:[#allocation7 + $0xb0] sm:$0xff]   ;;  %v842_v9 = vld [vmem:[#allocation7 + $0x68] sm:$0xff]  }
  0x37   :  { %v836_v3 = vld [vmem:[#allocation7 + $0x38] sm:$0xff]   ;;  %675 = vmatpush3.bf16.msra.mxu0 %v835_v2  ;;  %v840_v7 = vld [vmem:[#allocation7 + $0x30] sm:$0xff]   ;;  %v843_v10 = vld [vmem:[#allocation7 + $0xa8] sm:$0xff]  }
  0x38   :  { %697 = vmatpush3.bf16.msra.mxu1 %v836_v3  ;;  %676 = vmatprep.subr.bf16.mxu0 %v837_v4  ;;  %v844_v11 = vld [vmem:[#allocation7 + $0x28] sm:$0xff]   ;;  %v845_v12 = vld [vmem:[#allocation7 + $0xe0] sm:$0xff]   ;;  %v849_v16 = vld [vmem:[#allocation7 + $0xd8] sm:$0xff]   ;;  %v458_v4 = vlaneseq }
  0x39   :  { %698 = vmatprep.subr.bf16.mxu1 %v838_v5  ;;  %v846_v13 = vld [vmem:[#allocation7 + $0x60] sm:$0xff]   ;;  %v850_v17 = vld [vmem:[#allocation7 + $0x58] sm:$0xff]   ;;  %v853_v20 = vld [vmem:[#allocation7 + $0xd0] sm:$0xff]  }
  0x3a   :  { %v847_v14 = vld [vmem:[#allocation7 + $0xa0] sm:$0xff]   ;;  %v851_v18 = vld [vmem:[#allocation7 + $0x98] sm:$0xff]   ;;  %v854_v21 = vld [vmem:[#allocation7 + $0x50] sm:$0xff]   ;;  %v459_v5 = vshrl.u32 %v458_v4, 7 }
  0x3b   :  { %677 = vmatpush3.bf16.msra.mxu0 %v839_v6  ;;  %v848_v15 = vld [vmem:[#allocation7 + $0x20] sm:$0xff]   ;;  %v852_v19 = vld [vmem:[#allocation7 + $0x18] sm:$0xff]   ;;  %v855_v22 = vld [vmem:[#allocation7 + $0x90] sm:$0xff]  }
  0x3c   :  { %699 = vmatpush3.bf16.msra.mxu1 %v840_v7  ;;  %678 = vmatprep.subr.bf16.mxu0 %v841_v8  ;;  %v856_v23 = vld [vmem:[#allocation7 + $0x10] sm:$0xff]   ;;  %v857_v24 = vld [vmem:[#allocation7 + $0xc8] sm:$0xff]   ;;  %v861_v28 = vld [vmem:[#allocation7 + $0xc0] sm:$0xff]   ;;  %v460_v6 = vsub.s32 0, %v459_v5 }
  0x3d   :  { %700 = vmatprep.subr.bf16.mxu1 %v842_v9  ;;  %v858_v25 = vld [vmem:[#allocation7 + $0x48] sm:$0xff]   ;;  %v862_v29 = vld [vmem:[#allocation7 + $0x40] sm:$0xff]   ;;  %v74_v32 = vld [vmem:[#allocation5] sm:$0xff] }
  0x3e   :  { %v859_v26 = vld [vmem:[#allocation7 + $0x88] sm:$0xff]   ;;  %v863_v30 = vld [vmem:[#allocation7 + $0x80] sm:$0xff]   ;;  %v73_v33 = vld [vmem:[#allocation2] sm:$0xff]  ;;  %v637_v34 = vcombine.low %v74_v32, %v74_v32  ;;  %v638_v35 = vcombine.high %v74_v32, %v74_v32 }
  0x3f   :  { %679 = vmatpush3.bf16.msra.mxu0 %v843_v10  ;;  %v860_v27 = vld [vmem:[#allocation7 + $0x8] sm:$0xff]   ;;  %v864_v31 = vld [vmem:[#allocation7] sm:$0xff]   ;;  %v655_v36 = vcombine.low %v73_v33, %v73_v33  ;;  %v656_v37 = vcombine.high %v73_v33, %v73_v33  ;;  %v154_v39 = vld [vmem:[#allocation8 + $0x78] sm:$0xff] }
  0x40   :  { %701 = vmatpush3.bf16.msra.mxu1 %v844_v11  ;;  %680 = vmatprep.subr.bf16.mxu0 %v845_v12  ;;  %v153_v40 = vld [vmem:[#allocation8 + $0x70] sm:$0xff]  ;;  %v152_v41 = vld [vmem:[#allocation8 + $0x68] sm:$0xff]  ;;  %v151_v42 = vld [vmem:[#allocation8 + $0x60] sm:$0xff] }
  0x41   :  { %702 = vmatprep.subr.bf16.mxu1 %v846_v13  ;;  %307 = vmatprep.mubr.bf16.mxu0 %v638_v35  ;;  %v150_v43 = vld [vmem:[#allocation8 + $0x58] sm:$0xff]  ;;  %v149_v44 = vld [vmem:[#allocation8 + $0x50] sm:$0xff]  ;;  %v148_v45 = vld [vmem:[#allocation8 + $0x48] sm:$0xff] }
  0x42   :  { %450 = vmatprep.mubr.bf16.mxu1 %v656_v37  ;;  %v147_v46 = vld [vmem:[#allocation8 + $0x40] sm:$0xff]  ;;  %v146_v47 = vld [vmem:[#allocation8 + $0x38] sm:$0xff]  ;;  %v145_v48 = vld [vmem:[#allocation8 + $0x30] sm:$0xff] }
  0x43   :  { %681 = vmatpush3.bf16.msra.mxu0 %v847_v14  ;;  %v144_v49 = vld [vmem:[#allocation8 + $0x28] sm:$0xff]  ;;  %v143_v50 = vld [vmem:[#allocation8 + $0x20] sm:$0xff]  ;;  %v142_v51 = vld [vmem:[#allocation8 + $0x18] sm:$0xff] }
  0x44   :  { %703 = vmatpush3.bf16.msra.mxu1 %v848_v15  ;;  %682 = vmatprep.subr.bf16.mxu0 %v849_v16  ;;  %v141_v52 = vld [vmem:[#allocation8 + $0x10] sm:$0xff]  ;;  %v140_v53 = vld [vmem:[#allocation8 + $0x8] sm:$0xff]  ;;  %v139_v54 = vld [vmem:[#allocation8] sm:$0xff] }
  0x45   :  { %704 = vmatprep.subr.bf16.mxu1 %v850_v17  ;;  %v170_v55 = vld [vmem:[#allocation8 + $0xf8] sm:$0xff]  ;;  %v169_v56 = vld [vmem:[#allocation8 + $0xf0] sm:$0xff]  ;;  %v168_v57 = vld [vmem:[#allocation8 + $0xe8] sm:$0xff] }
  0x46   :  { %v167_v58 = vld [vmem:[#allocation8 + $0xe0] sm:$0xff]  ;;  %v166_v59 = vld [vmem:[#allocation8 + $0xd8] sm:$0xff]  ;;  %v165_v60 = vld [vmem:[#allocation8 + $0xd0] sm:$0xff] }
  0x47   :  { %683 = vmatpush3.bf16.msra.mxu0 %v851_v18  ;;  %v164_v61 = vld [vmem:[#allocation8 + $0xc8] sm:$0xff]  ;;  %v163_v62 = vld [vmem:[#allocation8 + $0xc0] sm:$0xff]  ;;  %v162_v63 = vld [vmem:[#allocation8 + $0xb8] sm:$0xff] }
  0x48   :  { %705 = vmatpush3.bf16.msra.mxu1 %v852_v19  ;;  %684 = vmatprep.subr.bf16.mxu0 %v853_v20  ;;  %v161_v0 = vld [vmem:[#allocation8 + $0xb0] sm:$0xff]  ;;  %v160_v1 = vld [vmem:[#allocation8 + $0xa8] sm:$0xff]  ;;  %v159_v2 = vld [vmem:[#allocation8 + $0xa0] sm:$0xff] }
  0x49   :  { %706 = vmatprep.subr.bf16.mxu1 %v854_v21  ;;  %v158_v3 = vld [vmem:[#allocation8 + $0x98] sm:$0xff]  ;;  %v171_v9 = vld [vmem:[%s1078_s4] sm:$0x7]  ;;  %s991_s4 = smov [#allocation10]  }
  0x4a   :  { %v461_v14 = vrot.slane %v171_v9, %v460_v6  ;;  %s626_s15 = sshll.u32 %s991_s4, 4  ;;  %s627_s15 = int_to_ptr.vmem [resolvable:$true] %s626_s15 }
  0x4b   :  { %685 = vmatpush3.bf16.msra.mxu0 %v855_v22  ;;  %v157_v22 = vld [vmem:[#allocation8 + $0x90] sm:$0xff]  ;;  %s953_s16 = scalar_lea.vmem %s627_s15, 128  ;;  %p958_p7 = scmp.lt.s32.totalorder %s627_s15, %s627_s15 }
  0x4c   :  { %707 = vmatpush3.bf16.msra.mxu1 %v856_v23  ;;  %686 = vmatprep.subr.bf16.mxu0 %v857_v24  ;;  %v156_v23 = vld [vmem:[#allocation8 + $0x88] sm:$0xff]  ;;  %v155_v24 = vld [vmem:[#allocation8 + $0x80] sm:$0xff]  ;;  %p954_p6 = scmp.ne.s32.totalorder %s627_s15, %s953_s16  ;;  %p959_p8 = scmp.lt.s32.totalorder %s953_s16, %s953_s16 }
  0x4d   :  { %708 = vmatprep.subr.bf16.mxu1 %v858_v25  ;;  %v466_v25 = vsub.s32 1, %v459_v5 }
  0x4e   :  { %p960_p9 = por %p959_p8, %p958_p7 }
  0x4f   :  { %687 = vmatpush3.bf16.msra.mxu0 %v859_v26  ;;  %v467_v26 = vrot.slane %v171_v9, %v466_v25 }
  0x50   :  { %709 = vmatpush3.bf16.msra.mxu1 %v860_v27  ;;  %688 = vmatprep.subr.bf16.mxu0 %v861_v28  ;;  %p961_p10 = pnand %p960_p9, %p954_p6 }
  0x51   :  { %710 = vmatprep.subr.bf16.mxu1 %v862_v29 }
  0x53   :  { %689 = vmatpush3.bf16.msra.mxu0 %v863_v30 }
  0x54   :  { %711 = vmatpush3.bf16.msra.mxu1 %v864_v31  ;;  %752 = vmatprep.subr.mxu0 %v989_v38  ;;  %v541_v31 = vsub.s32 2, %v459_v5 }
  0x55   :  { %787 = vmatprep.subr.mxu1 %v989_v38 }
  0x56   :  { %308 = vmatmul.mubr.bf16.vlgmr.msra.gmra.mxu0 %v637_v34  ;;  %v542_v32 = vrot.slane %v171_v9, %v541_v31 }
  0x57   :  { %451 = vmatmul.mubr.bf16.vlgmr.msra.gmra.mxu1 %v655_v36  ;;  %753 = vmatpush3.msra.mxu0 %v154_v39 }
  0x58   :  { %754 = vmatprep.subr.mxu0 %v989_v38  ;;  %784 = vmatprep.mubr.msk.f32.mxu0 %vm990_vm0, %v989_v38 }
  0x59   :  { %755 = vmatpush3.msra.mxu0 %v153_v40  ;;  %819 = vmatprep.mubr.msk.f32.mxu1 %vm990_vm0, %v989_v38 }
  0x5a   :  { %756 = vmatprep.subr.mxu0 %v989_v38  ;;  %788 = vmatpush3.msra.mxu1 %v170_v55 }
  0x5b   :  { %757 = vmatpush3.msra.mxu0 %v152_v41  ;;  %789 = vmatprep.subr.mxu1 %v989_v38 }
  0x5c   :  { %758 = vmatprep.subr.mxu0 %v989_v38  ;;  %790 = vmatpush3.msra.mxu1 %v169_v56 }
  0x5d   :  { %759 = vmatpush3.msra.mxu0 %v151_v42  ;;  %791 = vmatprep.subr.mxu1 %v989_v38 }
  0x5e   :  { %760 = vmatprep.subr.mxu0 %v989_v38  ;;  %792 = vmatpush3.msra.mxu1 %v168_v57 }
  0x5f   :  { %761 = vmatpush3.msra.mxu0 %v150_v43  ;;  %793 = vmatprep.subr.mxu1 %v989_v38 }
  0x60   :  { %762 = vmatprep.subr.mxu0 %v989_v38  ;;  %794 = vmatpush3.msra.mxu1 %v167_v58 }
  0x61   :  { %763 = vmatpush3.msra.mxu0 %v149_v44  ;;  %795 = vmatprep.subr.mxu1 %v989_v38 }
  0x62   :  { %764 = vmatprep.subr.mxu0 %v989_v38  ;;  %796 = vmatpush3.msra.mxu1 %v166_v59 }
  0x63   :  { %765 = vmatpush3.msra.mxu0 %v148_v45  ;;  %797 = vmatprep.subr.mxu1 %v989_v38 }
  0x64   :  { %766 = vmatprep.subr.mxu0 %v989_v38  ;;  %798 = vmatpush3.msra.mxu1 %v165_v60 }
  0x65   :  { %767 = vmatpush3.msra.mxu0 %v147_v46  ;;  %799 = vmatprep.subr.mxu1 %v989_v38 }
  0x66   :  { %768 = vmatprep.subr.mxu0 %v989_v38  ;;  %800 = vmatpush3.msra.mxu1 %v164_v61 }
  0x67   :  { %769 = vmatpush3.msra.mxu0 %v146_v47  ;;  %801 = vmatprep.subr.mxu1 %v989_v38 }
  0x68   :  { %770 = vmatprep.subr.mxu0 %v989_v38  ;;  %802 = vmatpush3.msra.mxu1 %v163_v62 }
  0x69   :  { %771 = vmatpush3.msra.mxu0 %v145_v48  ;;  %803 = vmatprep.subr.mxu1 %v989_v38 }
  0x6a   :  { %772 = vmatprep.subr.mxu0 %v989_v38  ;;  %804 = vmatpush3.msra.mxu1 %v162_v63 }
  0x6b   :  { %773 = vmatpush3.msra.mxu0 %v144_v49  ;;  %805 = vmatprep.subr.mxu1 %v989_v38 }
  0x6c   :  { %774 = vmatprep.subr.mxu0 %v989_v38  ;;  %806 = vmatpush3.msra.mxu1 %v161_v0 }
  0x6d   :  { %775 = vmatpush3.msra.mxu0 %v143_v50  ;;  %807 = vmatprep.subr.mxu1 %v989_v38 }
  0x6e   :  { %776 = vmatprep.subr.mxu0 %v989_v38  ;;  %808 = vmatpush3.msra.mxu1 %v160_v1 }
  0x6f   :  { %777 = vmatpush3.msra.mxu0 %v142_v51  ;;  %809 = vmatprep.subr.mxu1 %v989_v38 }
  0x70   :  { %778 = vmatprep.subr.mxu0 %v989_v38  ;;  %810 = vmatpush3.msra.mxu1 %v159_v2 }
  0x71   :  { %779 = vmatpush3.msra.mxu0 %v141_v52  ;;  %811 = vmatprep.subr.mxu1 %v989_v38 }
  0x72   :  { %780 = vmatprep.subr.mxu0 %v989_v38  ;;  %812 = vmatpush3.msra.mxu1 %v158_v3 }
  0x73   :  { %781 = vmatpush3.msra.mxu0 %v140_v53  ;;  %813 = vmatprep.subr.mxu1 %v989_v38 }
  0x74   :  { %782 = vmatprep.subr.mxu0 %v989_v38  ;;  %814 = vmatpush3.msra.mxu1 %v157_v22 }
  0x75   :  { %783 = vmatpush3.msra.mxu0 %v139_v54  ;;  %815 = vmatprep.subr.mxu1 %v989_v38 }
  0x76   :  { %816 = vmatpush3.msra.mxu1 %v156_v23 }
  0x77   :  { %817 = vmatprep.subr.mxu1 %v989_v38 }
  0x78   :  { %818 = vmatpush3.msra.mxu1 %v155_v24 }
 0x116   :  { %v690_v7 = vpop.f32.mrf.mxu0 }
 0x117   :  { %v712_v8 = vpop.f32.mrf.mxu1 }
 0x118   :  { %v691_v10 = vpop.f32.mrf.mxu0 }
 0x119   :  { %v713_v11 = vpop.f32.mrf.mxu1  ;;  %v692_v12 = vadd.f32 %v691_v10, %v690_v7 }
 0x11a   :  { %v714_v13 = vadd.f32 %v713_v11, %v712_v8  ;;  %v693_v15 = vpop.f32.mrf.mxu0 }
 0x11b   :  { %v715_v16 = vpop.f32.mrf.mxu1 }
 0x11c   :  { %v453_v17 = vadd.f32 %v714_v13, %v692_v12  ;;  %v694_v18 = vpop.f32.mrf.mxu0 }
 0x11d   :  { %v716_v19 = vpop.f32.mrf.mxu1 }
 0x11e   :  { %v462_v20 = vadd.f32 %v461_v14, %v453_v17 }
 0x120   :  { %v463_v21 = vmax.f32 %v462_v20, 0.0 }
 0x122   :  { %785 = vmatmul.mubr.f32.vlgmr.msra.gmra.mxu0 %v463_v21 }
 0x1e2   :  { %v534_v27 = vpop.f32.mrf.mxu0 }
 0x1e3   :  { %v535_v28 = vadd.f32 %v534_v27, %v467_v26 }
 0x1e4   :  { %v786_v29 = vpop.f32.mrf.mxu0 }
 0x1e5   :  { %v538_v30 = vmax.f32 %v535_v28, 0.0 }
 0x1e7   :  { %820 = vmatmul.mubr.f32.vlgmr.msra.gmra.mxu1 %v538_v30 }
 0x2a7   :  { %v609_v33 = vpop.f32.mrf.mxu1 }
 0x2a8   :  { %v610_v34 = vadd.f32 %v609_v33, %v542_v32 }
 0x2a9   :  { %v821_v35 = vpop.f32.mrf.mxu1 }
 0x2aa   :  { %v673_v36 = vmul.f32 -1.442695, %v610_v34 }
 0x2ac   :  { %869 = vpow2.f32 %v673_v36 }
 0x2b9   :  { %v870_v37 = vpop.eup %869 }
 0x2ba   :  { %v616_v39 = vadd.f32 1.0, %v870_v37 }
 0x2bc   :  { %871 = vrcp.f32 %v616_v39 }
 0x2c9   :  { %v872_v38 = vpop.eup %871 }
 0x2ca   :  { %619 = vst [vmem:[#allocation10] sm:$0xff] %v872_v38 }
 0x2cb   :  { %964 = shalt.err (!%p961_p10)
}
 0x2cc   :  { %629 = dma.vmem_to_hbm [thread:$0]  %s627_s15, 128, %s1079_s5, [#allocation4]  }
 0x2cd   :  { %979 = dma.done.wait [#allocation4], 128  }
 0x2ce   :  { %980 = vsyncadd [#allocation4], 4294967168 }
 0x2cf   :  { %633 = vsyncpa [#allocation3], 1 }
 0x2d0   :  { %634 = vsyncpa [#allocation6], 1 }
 0x2d1   :  { %635 = vsyncpa [#allocation9], 1 }
 0x2d2   :  { %636 = vsyncpa [#allocation4], 1 }

</bundles_post_ra>
